<compile_context>
chip_gen: v5e
topology: v5e:2x2
jax: 0.10.0
libtpu: 0.0.40
codegen_flags: <defaults>
</compile_context>

<pallas_src>
import functools

import jax
import jax.numpy as jnp
from jax.experimental import pallas as pl
from jax.experimental.pallas import tpu as pltpu

LANE = 128
SUBLANE = 8


def _round_up(n, m):
    return ((n + m - 1) // m) * m


def bf_encoder_kernel(x_ref, h_ref, wx_ref, wh_ref, b_ref, o_ref):
    # x_ref: (tb, 1)  h_ref: (tb, H)  wx_ref: (1, tn) f32  wh_ref: (H, tn)  b_ref: (1, tn) f32
    # VPU part: rank-1 contribution of the scalar input x + bias, in f32 (no K=1 MXU pass).
    z = x_ref[...].astype(jnp.float32) * wx_ref[...] + b_ref[...]          # (tb, tn)
    # MXU part: h @ Wh^T for this N-tile; operands in wh's dtype (bf16 on v6e/v7x),
    # accumulation in f32.
    z = z + jnp.dot(h_ref[...].astype(wh_ref.dtype), wh_ref[...],
                    preferred_element_type=jnp.float32)
    o_ref[...] = jnp.maximum(z, 0.0).astype(o_ref.dtype)


def prepare_params(weight, bias, *, mxu_dtype=jnp.float32):
    """One-time parameter prep (keep OUT of the hot path).

    weight: (H, 1+H) in PyTorch nn.Linear layout, bias: (H,).
    Returns:
      wx_p: (1, H) f32        -- column of `weight` multiplying the scalar input x (VPU path)
      wh_p: (H, H) mxu_dtype  -- weight[:, 1:] pre-transposed to contraction-major (MXU path)
      b_p : (1, H) f32
    """
    H = bias.shape[0]
    assert weight.shape == (H, 1 + H)
    wx_p = weight[:, 0].astype(jnp.float32).reshape(1, H)
    b_p = bias.astype(jnp.float32).reshape(1, H)
    wh_p = weight[:, 1:].T.astype(mxu_dtype)        # (H, H): h @ wh_p == h @ W[:,1:]^T
    return wx_p, wh_p, b_p


@functools.partial(jax.jit, static_argnames=("batch_tile", "n_tile", "out_dtype"))
def bf_encoder(x, h, wx_p, wh_p, b_p, *, batch_tile=512, n_tile=512, out_dtype=None):
    """x: (B, 1), h: (B, H); params from prepare_params. Returns (B, H)."""
    B = x.shape[0]
    H = h.shape[-1]
    if out_dtype is None:
        out_dtype = x.dtype

    # Batch tile: sublane-aligned. If the whole batch fits in one tile, shrink it so the
    # grid gets >= 2 steps (gives v7x's two TensorCores / the pipeline something to split).
    if B > batch_tile:
        tb = batch_tile
    else:
        tb = min(_round_up(pl.cdiv(B, 2), SUBLANE), _round_up(B, SUBLANE))

    # Output-feature (N) tile: full H when small, otherwise a 512-wide tile
    # (multiple of 256 for the v6e/v7x 2x256x256 MXU; multiple of 128 for lane density).
    if H <= n_tile:
        tn = H
    else:
        assert n_tile % LANE == 0, "n_tile must be a multiple of 128"
        tn = n_tile

    grid = (pl.cdiv(B, tb), pl.cdiv(H, tn))

    # Explicit scoped-VMEM ask: double-buffered blocks + headroom, capped at v7x's 64 MiB.
    x_it = jnp.dtype(x.dtype).itemsize
    h_it = jnp.dtype(h.dtype).itemsize
    w_it = jnp.dtype(wh_p.dtype).itemsize
    o_it = jnp.dtype(out_dtype).itemsize
    est = 2 * (tb * 1 * x_it + tb * H * h_it + tn * 4 + H * tn * w_it + tn * 4
               + tb * tn * o_it)
    vmem_limit = int(min(max(2 * est, 32 << 20), 64 << 20))

    out = pl.pallas_call(
        bf_encoder_kernel,
        out_shape=jax.ShapeDtypeStruct((B, H), out_dtype),
        grid=grid,
        in_specs=[
            pl.BlockSpec((tb, 1), lambda i, j: (i, 0)),    # x   : tiled over batch
            pl.BlockSpec((tb, H), lambda i, j: (i, 0)),    # h   : tiled over batch, full K
            pl.BlockSpec((1, tn), lambda i, j: (0, j)),    # wx  : tiled over N
            pl.BlockSpec((H, tn), lambda i, j: (0, j)),    # wh  : tiled over N
            pl.BlockSpec((1, tn), lambda i, j: (0, j)),    # bias: tiled over N
        ],
        out_specs=pl.BlockSpec((tb, tn), lambda i, j: (i, j)),
        compiler_params=pltpu.CompilerParams(
            dimension_semantics=("parallel", "parallel"),
            vmem_limit_bytes=vmem_limit,
        ),
    )(x, h, wx_p, wh_p, b_p)

    return out


if __name__ == "__main__":
    key = jax.random.PRNGKey(0)
    k_x, k_h, k_w, k_b = jax.random.split(key, 4)

    B = 8       # batch
    H = 32      # hidden_dim

    x = jax.random.normal(k_x, (B, 1), dtype=jnp.float32)
    h = jax.random.normal(k_h, (B, H), dtype=jnp.float32)

    # Deterministic params mimicking nn.Linear's U(-1/sqrt(fan_in), 1/sqrt(fan_in)).
    fan_in = 1 + H
    bound = 1.0 / jnp.sqrt(jnp.float32(fan_in))
    weight = jax.random.uniform(k_w, (H, 1 + H), jnp.float32, -bound, bound)
    bias = jax.random.uniform(k_b, (H,), jnp.float32, -bound, bound)

    # Plain-JAX reference of the PyTorch forward.
    ref = jnp.maximum(jnp.concatenate([x, h], axis=-1) @ weight.T + bias, 0.0)

    # Exact f32 path (tight check).
    wx_p, wh_p, b_p = prepare_params(weight, bias, mxu_dtype=jnp.float32)
    out = jax.block_until_ready(bf_encoder(x, h, wx_p, wh_p, b_p))
    assert out.shape == (B, H)
    assert jnp.allclose(out, ref, atol=1e-5, rtol=1e-5)

    # bf16-MXU path (v6e/v7x-friendly): bf16 MXU operands, f32 accumulate + f32 epilogue.
    wx_b, wh_b, b_b = prepare_params(weight, bias, mxu_dtype=jnp.bfloat16)
    out_bf16 = jax.block_until_ready(bf_encoder(x, h, wx_b, wh_b, b_b))
    assert out_bf16.shape == (B, H)
    assert jnp.allclose(out_bf16, ref, atol=5e-2, rtol=5e-2)

    print("KERNEL_OK")
</pallas_src>

<mosaic_0001>
module attributes {stable_mosaic.version = 11 : i64} {
  func.func @bf_encoder_kernel(%arg0: i32, %arg1: i32, %arg2: memref<8x1xf32, #tpu.memory_space<vmem>>, %arg3: memref<8x32xf32, #tpu.memory_space<vmem>>, %arg4: memref<1x32xf32, #tpu.memory_space<vmem>>, %arg5: memref<32x32xf32, #tpu.memory_space<vmem>>, %arg6: memref<1x32xf32, #tpu.memory_space<vmem>>, %arg7: memref<8x32xf32, #tpu.memory_space<vmem>>) attributes {dimension_semantics = [#tpu.dimension_semantics<parallel>, #tpu.dimension_semantics<parallel>], iteration_bounds = array<i64: 1, 1>, scalar_prefetch = 0 : i64, scratch_operands = 0 : i64, tpu.core_type = #tpu.core_type<tc>, window_params = [{transform_indices = @transform_0, window_bounds = array<i64: 8, 1>}, {transform_indices = @transform_1, window_bounds = array<i64: 8, 32>}, {transform_indices = @transform_2, window_bounds = array<i64: 1, 32>}, {transform_indices = @transform_3, window_bounds = array<i64: 32, 32>}, {transform_indices = @transform_4, window_bounds = array<i64: 1, 32>}, {transform_indices = @transform_5, window_bounds = array<i64: 8, 32>}]} {
    %c0 = arith.constant 0 : index
    %c0_0 = arith.constant 0 : index
    %0 = vector.load %arg2[%c0, %c0_0] : memref<8x1xf32, #tpu.memory_space<vmem>>, vector<8x1xf32>
    %c0_1 = arith.constant 0 : index
    %c0_2 = arith.constant 0 : index
    %1 = vector.load %arg4[%c0_1, %c0_2] : memref<1x32xf32, #tpu.memory_space<vmem>>, vector<1x32xf32>
    %2 = vector.broadcast %0 : vector<8x1xf32> to vector<8x32xf32>
    %3 = vector.broadcast %1 : vector<1x32xf32> to vector<8x32xf32>
    %4 = arith.mulf %2, %3 : vector<8x32xf32>
    %c0_3 = arith.constant 0 : index
    %c0_4 = arith.constant 0 : index
    %5 = vector.load %arg6[%c0_3, %c0_4] : memref<1x32xf32, #tpu.memory_space<vmem>>, vector<1x32xf32>
    %6 = vector.broadcast %5 : vector<1x32xf32> to vector<8x32xf32>
    %7 = arith.addf %4, %6 : vector<8x32xf32>
    %c0_5 = arith.constant 0 : index
    %c0_6 = arith.constant 0 : index
    %8 = vector.load %arg3[%c0_5, %c0_6] : memref<8x32xf32, #tpu.memory_space<vmem>>, vector<8x32xf32>
    %c0_7 = arith.constant 0 : index
    %c0_8 = arith.constant 0 : index
    %9 = vector.load %arg5[%c0_7, %c0_8] : memref<32x32xf32, #tpu.memory_space<vmem>>, vector<32x32xf32>
    %cst = arith.constant dense<0.000000e+00> : vector<8x32xf32>
    %10 = tpu.matmul %8, %9, %cst {dimension_numbers = #tpu.dot_dimension_numbers<[1], [0], [0], [1], [0, 0, 1, 1], [], []>} : vector<8x32xf32>, vector<32x32xf32>, vector<8x32xf32> -> vector<8x32xf32>
    %11 = arith.addf %7, %10 : vector<8x32xf32>
    %cst_9 = arith.constant 0.000000e+00 : f32
    %12 = vector.broadcast %cst_9 : f32 to vector<8x32xf32>
    %13 = arith.maximumf %11, %12 : vector<8x32xf32>
    %c0_10 = arith.constant 0 : index
    %c0_11 = arith.constant 0 : index
    %14 = vector.load %arg7[%c0_10, %c0_11] : memref<8x32xf32, #tpu.memory_space<vmem>>, vector<8x32xf32>
    tpu.vector_store %arg7[%c0_10, %c0_11], %13 {strides = array<i32>} : memref<8x32xf32, #tpu.memory_space<vmem>>, vector<8x32xf32>,
    return
  }
  func.func @transform_0(%arg0: i32, %arg1: i32) -> (i32, i32) {
    %c0_i32 = arith.constant 0 : i32
    %c0_i32_0 = arith.constant 0 : i32
    return %arg0, %c0_i32 : i32, i32
  }
  func.func @transform_1(%arg0: i32, %arg1: i32) -> (i32, i32) {
    %c0_i32 = arith.constant 0 : i32
    %c0_i32_0 = arith.constant 0 : i32
    return %arg0, %c0_i32 : i32, i32
  }
  func.func @transform_2(%arg0: i32, %arg1: i32) -> (i32, i32) {
    %c0_i32 = arith.constant 0 : i32
    %c0_i32_0 = arith.constant 0 : i32
    return %c0_i32, %arg1 : i32, i32
  }
  func.func @transform_3(%arg0: i32, %arg1: i32) -> (i32, i32) {
    %c0_i32 = arith.constant 0 : i32
    %c0_i32_0 = arith.constant 0 : i32
    return %c0_i32, %arg1 : i32, i32
  }
  func.func @transform_4(%arg0: i32, %arg1: i32) -> (i32, i32) {
    %c0_i32 = arith.constant 0 : i32
    %c0_i32_0 = arith.constant 0 : i32
    return %c0_i32, %arg1 : i32, i32
  }
  func.func @transform_5(%arg0: i32, %arg1: i32) -> (i32, i32) {
    %c0_i32 = arith.constant 0 : i32
    return %arg0, %arg1 : i32, i32
  }
}

</mosaic_0001>

<bundles_post_ra>
// kernel: bf_encoder.1
= control target key start
LH: loop header
LB: loop body
LE: loop exit
PB: predicated region body
PF: predicated region fallthrough
CT: control target
= control target key end

     0   :  { %10 = vsyncpa [#allocation3], 0  ;;  %s218_s0 = inlined_call_operand.vmem [shape: f32[8,1], index: 0, kind: input, shape index: {}]   ;;  %s219_s1 = inlined_call_operand.vmem [shape: f32[8,32], index: 1, kind: input, shape index: {}]   ;;  %s220_s2 = inlined_call_operand.vmem [shape: f32[1,32], index: 2, kind: input, shape index: {}]   ;;  %s221_s3 = inlined_call_operand.hbm [shape: f32[32,32], index: 3, kind: input, shape index: {}]   ;;  %s222_s4 = inlined_call_operand.vmem [shape: f32[1,32], index: 4, kind: input, shape index: {}]   ;;  %s223_s5 = inlined_call_operand.hbm [shape: f32[8,32], index: 5, kind: output, shape index: {}]  }
   0x1   :  { %11 = vsyncpa [#allocation4], 0  ;;  %s22_s20 = sshll.u32 %s221_s3, 4  ;;  %s163_s21 = smov [#allocation2]   ;;  %s23_s20 = int_to_ptr.hbm [resolvable:$true] %s22_s20 }
   0x2   :  { %s24_s22 = sshll.u32 %s163_s21, 4  ;;  %s164_s23 = smov 128   ;;  %s25_s22 = int_to_ptr.vmem [resolvable:$true] %s24_s22 }
   0x3   :  { %s165_s24 = smov 8  }
   0x4   :  { %30 = dma.hbm_to_vmem [thread:$0]  %s23_s20, 512, %s25_s22, [#allocation3], %s164_s23, %s164_s23, %s165_s24  }
   0x5   :  { %159 = dma.done.wait [#allocation3], 512  }
   0x6   :  { %160 = vsyncadd [#allocation3], 4294966784  ;;  %v166_v0 = vmov 0   ;;  %v57_v1 = vld [vmem:[#allocation2 + $0x18] sm:$0xff]  ;;  %v56_v2 = vld [vmem:[#allocation2 + $0x10] sm:$0xff]  ;;  %vm58_vm0 = vcmask 261120  }
   0x7   :  { %108 = vset.pattern.permute.xlu0 %v166_v0  ;;  %74 = vmatpush.msra.mxu0 %v57_v1  ;;  %v37_v3 = vld [vmem:[%s218_s0] sm:$0xff]  ;;  %v55_v4 = vld [vmem:[#allocation2 + $0x8] sm:$0xff]  ;;  %s167_s6 = smov [#allocation5]   ;;  %s92_s9 = sshll.u32 %s223_s5, 4  ;;  %s93_s9 = int_to_ptr.hbm [resolvable:$true] %s92_s9 }
   0x8   :  { %41 = vperm.xlu0 %108, %v37_v3   ;;  %v54_v5 = vld [vmem:[#allocation2] sm:$0xff]  ;;  %s90_s7 = sshll.u32 %s167_s6, 4  ;;  %s91_s7 = int_to_ptr.vmem [resolvable:$true] %s90_s7 }
   0x9   :  { %75 = vmatpush.msra.mxu0 %v56_v2  ;;  %v53_v6 = vld [vmem:[%s219_s1] sm:$0xff] }
   0xa   :  { %v109_v7 = vld [vmem:[%s220_s2] ss:$0 sm:$0xff] }
   0xb   :  { %76 = vmatpush.msra.mxu0 %v55_v4  ;;  %v110_v10 = vld [vmem:[%s222_s4] ss:$0 sm:$0xff] }
   0xd   :  { %77 = vmatpush.msra.mxu0 %v54_v5 }
   0xe   :  { %102 = vmatmul.msk.f32.vlgmr.msra.gmra.mxu0 %vm58_vm0, %v53_v6 }
  0x7a   :  { %v42_v8 = vpop.permute.xlu0 %41 }
  0x7b   :  { %v47_v9 = vmul.f32 %v109_v7, %v42_v8 }
  0x7d   :  { %v52_v11 = vadd.f32 %v110_v10, %v47_v9 }
  0x8b   :  { %v79_v12 = vpop.f32.mrf.mxu0 }
  0x8c   :  { %v82_v13 = vadd.f32 %v79_v12, %v52_v11 }
  0x8e   :  { %v83_v14 = vmax.f32 %v82_v13, 0.0 }
  0x90   :  { %84 = vst.msk [vmem:[#allocation5] sm:$0xff] %vm58_vm0, %v83_v14 }
  0x91   :  { %95 = dma.vmem_to_hbm [thread:$0]  %s91_s7, 128, %s93_s9, [#allocation4]  }
  0x92   :  { %161 = dma.done.wait [#allocation4], 128  }
  0x93   :  { %162 = vsyncadd [#allocation4], 4294967168 }
  0x94   :  { %100 = vsyncpa [#allocation3], 1 }
  0x95   :  { %101 = vsyncpa [#allocation4], 1 }

</bundles_post_ra>
